<compile_context>
chip_gen: v7x
topology: tpu7x:2x2x1
jax: 0.10.0
libtpu: 0.0.40
codegen_flags: <defaults>
</compile_context>

<pallas_src>
import functools

import jax
import jax.numpy as jnp
from jax.experimental import pallas as pl
from jax.experimental.pallas import tpu as pltpu


def _round_up(x, m):
    return ((x + m - 1) // m) * m


def _sublane_min(itemsize):
    # Minimum second-to-last tile dim per dtype width (f32/int32: 8, bf16: 16, int8/fp8: 32).
    return {1: 32, 2: 16}.get(itemsize, 8)


def _vmem_capacity_bytes():
    try:
        return int(pltpu.get_tpu_info().vmem_capacity_bytes)
    except Exception:
        return 64 << 20  # conservative (v7x-sized) default if the query is unavailable


def _budgets():
    """(per-input tile bytes, vmem_limit cap, small_vmem flag) for this chip."""
    vmem_cap = _vmem_capacity_bytes()
    small_vmem = vmem_cap <= (64 << 20)           # v7x-class core (also 2 TCs/chip)
    per_tile = (4 << 20) if small_vmem else (8 << 20)
    limit_cap = (48 << 20) if small_vmem else (100 << 20)
    return per_tile, limit_cap, small_vmem


_MIN_ROWS = 256  # prefer keeping the full feature dim per tile while >= this many rows fit


# --------------------------------------------------------------------------- #
# Kernels
# --------------------------------------------------------------------------- #
def _hamming_rowsum_kernel(x1_ref, x2_ref, o_ref, *, d_total):
    """Single feature block per row block: full-row mismatch mean in one shot."""
    mism = (x1_ref[...] != x2_ref[...]).astype(jnp.float32)
    o_ref[...] = jnp.sum(mism, axis=-1, keepdims=True) / d_total


def _hamming_acc_kernel(x1_ref, x2_ref, o_ref, acc_ref, *, block_d, d_total, mask_d):
    """Multi feature block: lane-wide f32 accumulator, cross-lane reduce in epilogue."""
    k = pl.program_id(1)

    @pl.when(k == 0)
    def _():
        acc_ref[...] = jnp.zeros_like(acc_ref)

    mism = (x1_ref[...] != x2_ref[...]).astype(jnp.float32)
    if mask_d:
        # Ragged feature tail: out-of-bounds columns of the last block hold
        # unspecified data that differs between x1 and x2 -> must be zeroed.
        col = k * block_d + jax.lax.broadcasted_iota(jnp.int32, mism.shape, 1)
        mism = jnp.where(col < d_total, mism, 0.0)

    # Fold lane groups with VPU adds only; the single cross-lane (XLU)
    # reduction is deferred to the last-k epilogue.
    partial = mism[:, 0:128]
    for g in range(1, block_d // 128):
        partial = partial + mism[:, g * 128:(g + 1) * 128]
    acc_ref[...] += partial

    @pl.when(k == pl.num_programs(1) - 1)
    def _():
        o_ref[...] = jnp.sum(acc_ref[...], axis=-1, keepdims=True) / d_total


def _hamming_nd_kernel(x1_ref, x2_ref, o_ref, *, block_d, d_total, mask_d):
    """(block_n, block_d, block_r) tiles of the ORIGINAL layout; reduce over axis 1."""
    k = pl.program_id(2)

    @pl.when(k == 0)
    def _():
        o_ref[...] = jnp.zeros_like(o_ref)      # output block is VMEM-resident across k

    mism = (x1_ref[...] != x2_ref[...]).astype(jnp.float32)
    if mask_d:
        d_idx = k * block_d + jax.lax.broadcasted_iota(jnp.int32, mism.shape, 1)
        mism = jnp.where(d_idx < d_total, mism, 0.0)

    o_ref[...] += jnp.sum(mism, axis=1)

    @pl.when(k == pl.num_programs(2) - 1)
    def _():
        o_ref[...] = o_ref[...] / d_total


# --------------------------------------------------------------------------- #
# Drivers
# --------------------------------------------------------------------------- #
def _hamming_2d(x1, x2, *, block_n=None, block_d=None):
    N, D = x1.shape
    itemsize = jnp.dtype(x1.dtype).itemsize
    sub = _sublane_min(itemsize)
    per_tile, limit_cap, small_vmem = _budgets()
    max_elems = max(per_tile // itemsize, 128 * sub)

    # --- feature (lane) tiling -------------------------------------------
    if block_d is None:
        max_d = max(128, max_elems // max(_MIN_ROWS, sub))
        block_d = D if D <= max_d else _round_up(pl.cdiv(D, pl.cdiv(D, max_d)), 128)
    if block_d >= D:
        block_d = D                              # single feature block: full dim, any width
    else:
        block_d = _round_up(block_d, 128)        # partial lane blocks must be 128-multiples
        if block_d >= D:
            block_d = D

    # --- row (sublane) tiling --------------------------------------------
    if block_n is None:
        rows = max(sub, max_elems // max(block_d, 1))
        block_n = max(sub, min((rows // sub) * sub, _round_up(N, sub)))
        if small_vmem and N > sub and pl.cdiv(N, block_n) % 2 == 1:
            # v7x: 2 TensorCores share the parallel row axis; keep an even
            # number of row blocks so neither core idles (best effort).
            block_n = max(sub, _round_up(pl.cdiv(N, pl.cdiv(N, block_n) + 1), sub))
    if N <= sub:
        block_n = N                              # tiny batch: full-dim block is always legal
    elif block_n % sub:
        block_n = _round_up(block_n, sub)
    block_n = min(block_n, _round_up(N, sub))

    grid_n = pl.cdiv(N, block_n)

    # 2 inputs x double buffering + room for the f32 mismatch temporary + small out/acc.
    tile_bytes = block_n * block_d * itemsize
    vmem_needed = 4 * tile_bytes + 2 * block_n * block_d * 4 + (4 << 20)
    vmem_limit = int(min(limit_cap, max(32 << 20, vmem_needed)))

    out_shape = jax.ShapeDtypeStruct((N, 1), jnp.float32)

    if block_d == D:
        kernel = functools.partial(_hamming_rowsum_kernel, d_total=float(D))
        out = pl.pallas_call(
            kernel,
            out_shape=out_shape,
            grid_spec=pltpu.PrefetchScalarGridSpec(
                num_scalar_prefetch=0,
                grid=(grid_n,),
                in_specs=[pl.BlockSpec((block_n, D), lambda i: (i, 0)),
                          pl.BlockSpec((block_n, D), lambda i: (i, 0))],
                out_specs=pl.BlockSpec((block_n, 1), lambda i: (i, 0)),
            ),
            compiler_params=pltpu.CompilerParams(
                dimension_semantics=("parallel",),
                vmem_limit_bytes=vmem_limit,
            ),
        )(x1, x2)
    else:
        grid_d = pl.cdiv(D, block_d)
        kernel = functools.partial(_hamming_acc_kernel, block_d=block_d,
                                   d_total=float(D), mask_d=(D % block_d != 0))
        out = pl.pallas_call(
            kernel,
            out_shape=out_shape,
            grid_spec=pltpu.PrefetchScalarGridSpec(
                num_scalar_prefetch=0,
                grid=(grid_n, grid_d),
                in_specs=[pl.BlockSpec((block_n, block_d), lambda i, k: (i, k)),
                          pl.BlockSpec((block_n, block_d), lambda i, k: (i, k))],
                out_specs=pl.BlockSpec((block_n, 1), lambda i, k: (i, 0)),
                scratch_shapes=[pltpu.VMEM((block_n, 128), jnp.float32)],
            ),
            compiler_params=pltpu.CompilerParams(
                dimension_semantics=("parallel", "arbitrary"),
                vmem_limit_bytes=vmem_limit,
            ),
        )(x1, x2)

    return out[:, 0]


def _hamming_nd(x1, x2):
    """mean(x1 != x2) over dim 1 for ndim > 2, reading the original layout (no transpose copy)."""
    N, D = x1.shape[0], x1.shape[1]
    rest = x1.shape[2:]
    R = 1
    for s in rest:
        R *= s
    a = x1.reshape(N, D, R)                      # trailing-dim merge: layout preserving
    b = x2.reshape(N, D, R)

    itemsize = jnp.dtype(x1.dtype).itemsize
    sub = _sublane_min(itemsize)
    per_tile, limit_cap, _ = _budgets()
    max_elems = max(per_tile // itemsize, 128 * sub)

    # lanes: flattened trailing dims;  sublanes: the reduced feature dim (dim 1)
    block_r = R if R <= 4096 else 4096
    d_fit = max(sub, ((max_elems // max(block_r, 1)) // sub) * sub)
    block_d = D if D <= d_fit else d_fit
    n_fit = max(1, max_elems // max(block_d * block_r, 1))
    block_n = N if N <= 8 else max(8, min((n_fit // 8) * 8, _round_up(N, 8)))

    grid = (pl.cdiv(N, block_n), pl.cdiv(R, block_r), pl.cdiv(D, block_d))
    mask_d = (block_d < D) and (D % block_d != 0)

    tile_bytes = block_n * block_d * block_r * itemsize
    vmem_needed = 4 * tile_bytes + 2 * block_n * block_d * block_r * 4 + (4 << 20)
    vmem_limit = int(min(limit_cap, max(32 << 20, vmem_needed)))

    kernel = functools.partial(_hamming_nd_kernel, block_d=block_d,
                               d_total=float(D), mask_d=mask_d)
    out = pl.pallas_call(
        kernel,
        out_shape=jax.ShapeDtypeStruct((N, R), jnp.float32),
        grid_spec=pltpu.PrefetchScalarGridSpec(
            num_scalar_prefetch=0,
            grid=grid,
            in_specs=[
                pl.BlockSpec((block_n, block_d, block_r), lambda i, j, k: (i, k, j)),
                pl.BlockSpec((block_n, block_d, block_r), lambda i, j, k: (i, k, j)),
            ],
            out_specs=pl.BlockSpec((block_n, block_r), lambda i, j, k: (i, j)),
        ),
        compiler_params=pltpu.CompilerParams(
            dimension_semantics=("parallel", "parallel", "arbitrary"),
            vmem_limit_bytes=vmem_limit,
        ),
    )(a, b)
    return out.reshape((N,) + rest)


def hamming_distance(x1, x2, *, block_n=None, block_d=None):
    """Pallas equivalent of HammingDistance.forward(x1, x2): mean(x1 != x2) over dim 1."""
    assert x1.shape == x2.shape, "x1 and x2 must have the same shape"
    assert x1.ndim >= 2, "need at least 2 dims (reduction is over dim 1)"
    if x1.ndim == 2:
        return _hamming_2d(x1, x2, block_n=block_n, block_d=block_d)
    return _hamming_nd(x1, x2)


def _reference(x1, x2):
    return jnp.mean((x1 != x2).astype(jnp.float32), axis=1)


if __name__ == "__main__":
    key = jax.random.PRNGKey(0)
    k1, k2, k3, k4, k5, k6 = jax.random.split(key, 6)

    # 1) Canonical use: batch of 8 binary codes, hidden size 32 (single-block path).
    N, D = 8, 32
    x1 = jax.random.randint(k1, (N, D), 0, 2).astype(jnp.float32)
    x2 = jax.random.randint(k2, (N, D), 0, 2).astype(jnp.float32)
    out = jax.block_until_ready(hamming_distance(x1, x2))
    ref = _reference(x1, x2)
    assert out.shape == (N,), f"bad output shape {out.shape}"
    assert jnp.allclose(out, ref, rtol=1e-5, atol=1e-6), "mismatch vs reference (small case)"

    # 2) Ragged rows/features with forced small tiles: exercises the cdiv grid
    #    (no host-side padding), the in-kernel feature-tail mask and the
    #    lane-wide accumulator / pl.when init-finalize path.
    N2, D2 = 20, 300
    y1 = jax.random.randint(k3, (N2, D2), 0, 4).astype(jnp.float32)
    y2 = jax.random.randint(k4, (N2, D2), 0, 4).astype(jnp.float32)
    out2 = jax.block_until_ready(hamming_distance(y1, y2, block_n=16, block_d=128))
    ref2 = _reference(y1, y2)
    assert out2.shape == (N2,), f"bad output shape {out2.shape}"
    assert jnp.allclose(out2, ref2, rtol=1e-5, atol=1e-6), "mismatch vs reference (ragged case)"

    # 3) N-D input (reduction over dim 1 via the 3-D grid, no transpose copy).
    shp = (4, 8, 16, 8)   # batch=4, channels=8 (reduced), spatial=16x8
    z1 = jax.random.randint(k5, shp, 0, 2).astype(jnp.float32)
    z2 = jax.random.randint(k6, shp, 0, 2).astype(jnp.float32)
    out3 = jax.block_until_ready(hamming_distance(z1, z2))
    ref3 = jnp.mean((z1 != z2).astype(jnp.float32), axis=1)
    assert out3.shape == (4, 16, 8), f"bad output shape {out3.shape}"
    assert jnp.allclose(out3, ref3, rtol=1e-5, atol=1e-6), "mismatch vs reference (N-D case)"

    print("KERNEL_OK")
</pallas_src>

<mosaic_0001>
module attributes {stable_mosaic.version = 11 : i64} {
  func.func @_hamming_rowsum_kernel(%arg0: i32, %arg1: memref<8x32xf32, #tpu.memory_space<vmem>>, %arg2: memref<8x32xf32, #tpu.memory_space<vmem>>, %arg3: memref<8x1xf32, #tpu.memory_space<vmem>>) attributes {dimension_semantics = [#tpu.dimension_semantics<parallel>], iteration_bounds = array<i64: 1>, scalar_prefetch = 0 : i64, scratch_operands = 0 : i64, tpu.core_type = #tpu.core_type<tc>, window_params = [{transform_indices = @transform_0, window_bounds = array<i64: 8, 32>}, {transform_indices = @transform_1, window_bounds = array<i64: 8, 32>}, {transform_indices = @transform_2, window_bounds = array<i64: 8, 1>}]} {
    %c0 = arith.constant 0 : index
    %c0_0 = arith.constant 0 : index
    %0 = vector.load %arg1[%c0, %c0_0] : memref<8x32xf32, #tpu.memory_space<vmem>>, vector<8x32xf32>
    %c0_1 = arith.constant 0 : index
    %c0_2 = arith.constant 0 : index
    %1 = vector.load %arg2[%c0_1, %c0_2] : memref<8x32xf32, #tpu.memory_space<vmem>>, vector<8x32xf32>
    %2 = arith.cmpf one, %0, %1 : vector<8x32xf32>
    %3 = arith.extui %2 : vector<8x32xi1> to vector<8x32xi32>
    %4 = arith.sitofp %3 : vector<8x32xi32> to vector<8x32xf32>
    %cst = arith.constant dense<0.000000e+00> : vector<8xf32>
    %5 = vector.multi_reduction <add>, %4, %cst [1] : vector<8x32xf32> to vector<8xf32>
    %6 = vector.shape_cast %5 : vector<8xf32> to vector<8x1xf32>
    %cst_3 = arith.constant 3.200000e+01 : f32
    %7 = vector.broadcast %cst_3 : f32 to vector<8x1xf32>
    %8 = arith.divf %6, %7 : vector<8x1xf32>
    %c0_4 = arith.constant 0 : index
    %c0_5 = arith.constant 0 : index
    %9 = vector.load %arg3[%c0_4, %c0_5] : memref<8x1xf32, #tpu.memory_space<vmem>>, vector<8x1xf32>
    tpu.vector_store %arg3[%c0_4, %c0_5], %8 {strides = array<i32>} : memref<8x1xf32, #tpu.memory_space<vmem>>, vector<8x1xf32>,
    return
  }
  func.func @transform_0(%arg0: i32) -> (i32, i32) {
    %c0_i32 = arith.constant 0 : i32
    %c0_i32_0 = arith.constant 0 : i32
    return %arg0, %c0_i32 : i32, i32
  }
  func.func @transform_1(%arg0: i32) -> (i32, i32) {
    %c0_i32 = arith.constant 0 : i32
    %c0_i32_0 = arith.constant 0 : i32
    return %arg0, %c0_i32 : i32, i32
  }
  func.func @transform_2(%arg0: i32) -> (i32, i32) {
    %c0_i32 = arith.constant 0 : i32
    %c0_i32_0 = arith.constant 0 : i32
    return %arg0, %c0_i32 : i32, i32
  }
}

</mosaic_0001>

<bundles_post_ra>
// kernel: tpu_custom_call.1
= control target key start
LH: loop header
LB: loop body
LE: loop exit
PB: predicated region body
PF: predicated region fallthrough
CT: control target
= control target key end

     0   :  { %7 = vsyncpa [#allocation3], 0  ;;  %s151_s0 = inlined_call_operand.hbm [shape: f32[8,32], index: 0, kind: input, shape index: {}]   ;;  %s152_s1 = inlined_call_operand.hbm [shape: f32[8,32], index: 1, kind: input, shape index: {}]   ;;  %s153_s2 = inlined_call_operand.vmem [shape: f32[8,1], index: 2, kind: output, shape index: {}]  }
   0x1   :  { %8 = vsyncpa [#allocation5], 0  ;;  %s106_s9 = smov [#allocation2]   ;;  %s107_s11 = smov [#allocation4]  }
   0x2   :  { %s15_s10 = sshll.u32 %s106_s9, 4  ;;  %s25_s12 = sshll.u32 %s107_s11, 4  ;;  %s16_s10 = int_to_ptr.vmem [resolvable:$true] %s15_s10  ;;  %s26_s12 = int_to_ptr.vmem [resolvable:$true] %s25_s12 }
   0x3   :  { %s58_s15 = scalar_lea.hbm %s151_s0, 128 }
   0x4   :  { %p59_p0 = scmp.ne.s32.totalorder %s151_s0, %s58_s15  ;;  %p62_p1 = scmp.lt.u32.totalorder %s58_s15, %s151_s0 }
   0x6   :  { %p64_p2 = pnand %p62_p1, %p59_p0 }
   0x8   :  { %67 = shalt.err (!%p64_p2)
}
   0x9   :  { %s68_s20 = scalar_lea.vmem %s16_s10, 128  ;;  %p73_p4 = scmp.lt.s32.totalorder %s16_s10, %s16_s10 }
   0xa   :  { %p69_p3 = scmp.ne.s32.totalorder %s16_s10, %s68_s20  ;;  %p74_p5 = scmp.lt.s32.totalorder %s68_s20, %s68_s20 }
   0xc   :  { %p75_p6 = por %p74_p5, %p73_p4 }
   0xe   :  { %p76_p7 = pnand %p75_p6, %p69_p3 }
  0x10   :  { %79 = shalt.err (!%p76_p7)
}
  0x11   :  { %18 = dma.hbm_to_vmem [thread:$0]  %s151_s0, 128, %s16_s10, [#allocation3]  }
  0x12   :  { %s80_s25 = scalar_lea.hbm %s152_s1, 128 }
  0x13   :  { %p81_p8 = scmp.ne.s32.totalorder %s152_s1, %s80_s25  ;;  %p84_p9 = scmp.lt.u32.totalorder %s80_s25, %s152_s1 }
  0x15   :  { %p86_p10 = pnand %p84_p9, %p81_p8 }
  0x17   :  { %89 = shalt.err (!%p86_p10)
}
  0x18   :  { %s90_s30 = scalar_lea.vmem %s26_s12, 128  ;;  %p95_p12 = scmp.lt.s32.totalorder %s26_s12, %s26_s12 }
  0x19   :  { %p91_p11 = scmp.ne.s32.totalorder %s26_s12, %s90_s30  ;;  %p96_p13 = scmp.lt.s32.totalorder %s90_s30, %s90_s30 }
  0x1b   :  { %p97_p0 = por %p96_p13, %p95_p12 }
  0x1d   :  { %p98_p1 = pnand %p97_p0, %p91_p11 }
  0x1f   :  { %101 = shalt.err (!%p98_p1)
}
  0x20   :  { %28 = dma.hbm_to_vmem [thread:$0]  %s152_s1, 128, %s26_s12, [#allocation5]  }
  0x21   :  { %102 = dma.done.wait [#allocation3], 128  }
  0x22   :  { %103 = vsyncadd [#allocation3], 4294967168 }
  0x23   :  { %104 = dma.done.wait [#allocation5], 128  }
  0x24   :  { %105 = vsyncadd [#allocation5], 4294967168  ;;  %v35_v0 = vld [vmem:[#allocation2] sm:$0xff]  ;;  %v36_v1 = vld [vmem:[#allocation4] sm:$0xff]  ;;  %vm40_vm0 = vcmask 261120   ;;  %v108_v2 = vmov 0.0  }
  0x25   :  { %vm37_vm1 = vcmp.ne.f32.partialorder %v35_v0, %v36_v1  ;;  %vm46_vm2 = vcmask 7168  }
  0x26   :  { %v54_v3 = vsel %vm37_vm1, 1.0, %v108_v2 }
  0x27   :  { %v41_v4 = vsel %vm40_vm0, %v54_v3, 0.0 }
  0x28   :  { %42 = vadd.xlane.f32.xlu0 %v41_v4 }
  0xb5   :  { %v43_v5 = vpop.xlane.xlu0 %42 }
  0xb6   :  { %v45_v6 = vmul.f32 0.03125, %v43_v5 }
  0xb8   :  { %47 = vst.msk [vmem:[%s153_s2] sm:$0xff] %vm46_vm2, %v45_v6 }
  0xb9   :  { %52 = vsyncpa [#allocation3], 1 }
  0xba   :  { %53 = vsyncpa [#allocation5], 1 }

</bundles_post_ra>
